<compile_context>
chip_gen: v5e
topology: v5e:2x2
jax: 0.10.0
libtpu: 0.0.40
codegen_flags: <defaults>
</compile_context>

<pallas_src>
import jax
import jax.numpy as jnp
from jax.experimental import pallas as pl
from jax.experimental.pallas import tpu as pltpu


# ----------------------------- helpers --------------------------------------

def _round_up(v, m):
    return ((v + m - 1) // m) * m


def _cdiv(a, b):
    return -(-a // b)


def _vmem_capacity_bytes():
    """Physical VMEM capacity of the current TPU generation (fallback: 64 MiB)."""
    try:
        cap = int(pltpu.get_tpu_info().vmem_capacity_bytes)
        if cap > 0:
            return cap
    except Exception:
        pass
    return 64 * 1024 * 1024  # conservative (v7x per-TC size)


def _vmem_estimate(tile, in_p, h_p, out_p, w_bytes, x_bytes, has_shortcut, fused):
    """Approximate VMEM bytes for one pipelined grid step.

    x / out tiles are double-buffered by the pipeline; weights and biases are
    grid-invariant (index_map == (0, 0)) so they are counted once.
    """
    x_b = 2 * x_bytes * tile * in_p
    o_b = 2 * 4 * tile * out_p
    w_elems = in_p * h_p + h_p * out_p
    if has_shortcut:
        w_elems += in_p * out_p
    w_b = w_bytes * w_elems + 4 * (h_p + out_p)
    # Live body intermediates: f32 relu(x)/net/out + bf16 cast copies (+ concat LHS).
    tmp = 4 * tile * (in_p + h_p + out_p)
    tmp += w_bytes * tile * (in_p + h_p)
    if fused:
        tmp += w_bytes * tile * (in_p + h_p)
    return x_b + o_b + w_b + tmp


# ----------------------------- Pallas kernels --------------------------------

def _resnet_block_kernel_identity(x_ref, w0_ref, b0_ref, w1_ref, b1_ref, o_ref):
    """One batch-tile, identity shortcut (size_in == size_out)."""
    x = x_ref[...].astype(jnp.float32)
    h = jnp.maximum(x, 0.0)
    net = jnp.dot(h.astype(w0_ref.dtype), w0_ref[...],
                  preferred_element_type=jnp.float32) + b0_ref[...]
    a = jnp.maximum(net, 0.0)
    dx = jnp.dot(a.astype(w1_ref.dtype), w1_ref[...],
                 preferred_element_type=jnp.float32) + b1_ref[...]
    o_ref[...] = (x + dx).astype(o_ref.dtype)


def _resnet_block_kernel_shortcut(x_ref, w0_ref, b0_ref, w1_ref, b1_ref,
                                  ws_ref, o_ref):
    """One batch-tile, bias-free linear shortcut, separate dx / x_s matmuls."""
    x = x_ref[...].astype(jnp.float32)
    h = jnp.maximum(x, 0.0)
    net = jnp.dot(h.astype(w0_ref.dtype), w0_ref[...],
                  preferred_element_type=jnp.float32) + b0_ref[...]
    a = jnp.maximum(net, 0.0)
    dx = jnp.dot(a.astype(w1_ref.dtype), w1_ref[...],
                 preferred_element_type=jnp.float32) + b1_ref[...]
    x_s = jnp.dot(x.astype(ws_ref.dtype), ws_ref[...],
                  preferred_element_type=jnp.float32)
    o_ref[...] = (x_s + dx).astype(o_ref.dtype)


def _resnet_block_kernel_shortcut_fused(x_ref, w0_ref, b0_ref, wcat_ref, b1_ref,
                                        o_ref):
    """One batch-tile, shortcut variant with dx/x_s fused into a single MXU pass.

    wcat = [w1 ; ws] stacked along K, so  out = [relu(net), x] @ wcat + b1.
    """
    x = x_ref[...].astype(jnp.float32)
    h = jnp.maximum(x, 0.0)
    net = jnp.dot(h.astype(w0_ref.dtype), w0_ref[...],
                  preferred_element_type=jnp.float32) + b0_ref[...]
    a = jnp.maximum(net, 0.0)
    lhs = jnp.concatenate([a.astype(wcat_ref.dtype), x.astype(wcat_ref.dtype)],
                          axis=-1)                      # (tile, h_p + in_p)
    out = jnp.dot(lhs, wcat_ref[...],
                  preferred_element_type=jnp.float32) + b1_ref[...]
    o_ref[...] = out.astype(o_ref.dtype)


# ---------------------------- param preparation --------------------------------

def prepare_params(params, *, use_bf16=True, fuse_shortcut=True):
    """Pad / cast the static parameters once; the result is reusable across calls.

    params: w0 (size_in, size_h), b0 (size_h,), w1 (size_h, size_out),
            b1 (size_out,), optional ws (size_in, size_out)   [weights = PyTorch W.T]
    Zero padding to 128-multiples is numerically a no-op (relu(0)=0, zero weight
    rows/cols contribute nothing).
    """
    size_in, size_h = params["w0"].shape
    size_out = params["w1"].shape[1]
    has_shortcut = params.get("ws", None) is not None
    if not has_shortcut:
        assert size_in == size_out, "identity shortcut requires size_in == size_out"

    in_p = _round_up(size_in, 128)
    h_p = _round_up(size_h, 128)
    out_p = _round_up(size_out, 128)
    w_dtype = jnp.bfloat16 if use_bf16 else jnp.float32

    w0p = jnp.pad(params["w0"], ((0, in_p - size_in), (0, h_p - size_h))).astype(w_dtype)
    b0p = jnp.pad(params["b0"], (0, h_p - size_h)).reshape(1, h_p).astype(jnp.float32)
    w1p = jnp.pad(params["w1"], ((0, h_p - size_h), (0, out_p - size_out))).astype(w_dtype)
    b1p = jnp.pad(params["b1"], (0, out_p - size_out)).reshape(1, out_p).astype(jnp.float32)

    prep = {
        "size_in": size_in, "size_h": size_h, "size_out": size_out,
        "in_p": in_p, "h_p": h_p, "out_p": out_p,
        "w_dtype": w_dtype, "has_shortcut": has_shortcut, "fused": False,
        "w0": w0p, "b0": b0p, "w1": w1p, "b1": b1p,
    }
    if has_shortcut:
        wsp = jnp.pad(params["ws"],
                      ((0, in_p - size_in), (0, out_p - size_out))).astype(w_dtype)
        # Fuse dx and x_s into one K=(h_p+in_p) contraction when the concat temp is cheap.
        if fuse_shortcut and h_p <= 256 and in_p <= 256:
            prep["wcat"] = jnp.concatenate([w1p, wsp], axis=0)   # (h_p + in_p, out_p)
            prep["fused"] = True
        else:
            prep["ws"] = wsp
    return prep


# ------------------------------ JAX wrapper -----------------------------------

def resnet_block_fc(x, params, *, block_rows=1024, bf16_activations=False):
    """ResnetBlockFC forward on TPU via Pallas.

    x: (N, size_in).  `params` is either a raw parameter dict (padded/cast per call —
    prefer calling prepare_params() once and reusing the result) or the output of
    prepare_params().  Output dtype follows x.dtype (f32 accumulation inside).
    bf16_activations=True streams x to the kernel in bf16 (halves x HBM traffic;
    slightly relaxed accuracy).
    """
    prep = params if "in_p" in params else prepare_params(params)

    n, size_in = x.shape
    assert size_in == prep["size_in"]
    size_out = prep["size_out"]
    in_p, h_p, out_p = prep["in_p"], prep["h_p"], prep["out_p"]
    has_shortcut, fused = prep["has_shortcut"], prep["fused"]

    out_dtype = x.dtype
    act_dtype = jnp.bfloat16 if bf16_activations else x.dtype
    x_bytes = jnp.dtype(act_dtype).itemsize
    w_bytes = jnp.dtype(prep["w_dtype"]).itemsize

    # ---- Row-tile selection: balanced tiles, >=2 grid steps for megacore, VMEM-budgeted
    #      against the real on-chip capacity of this TPU generation.
    row_align = 16
    vmem_cap = _vmem_capacity_bytes()
    budget = vmem_cap * 3 // 4

    steps = max(1, _cdiv(n, max(block_rows, row_align)))
    if steps == 1 and n >= 256:
        steps = 2                      # v7x: give the second TensorCore work
    while True:
        tile = _round_up(_cdiv(n, steps), row_align)
        est = _vmem_estimate(tile, in_p, h_p, out_p, w_bytes, x_bytes,
                             has_shortcut, fused)
        if est <= budget or tile <= row_align:
            break
        steps = max(steps + 1, _cdiv(steps * est, budget))
    n_p = _round_up(n, tile)
    grid = (n_p // tile,)

    vmem_est = _vmem_estimate(tile, in_p, h_p, out_p, w_bytes, x_bytes,
                              has_shortcut, fused)
    vmem_limit = int(min(max(vmem_est * 3 // 2, 32 * 1024 * 1024),
                         vmem_cap - 4 * 1024 * 1024))
    compiler_params = pltpu.CompilerParams(
        dimension_semantics=("parallel",),   # shards grid steps across both TCs on v7x
        vmem_limit_bytes=vmem_limit,
    )

    # ---- Pad x only when actually required (no-op HBM round trips otherwise).
    xp = x.astype(act_dtype) if x.dtype != act_dtype else x
    if n_p != n or in_p != size_in:
        xp = jnp.pad(xp, ((0, n_p - n), (0, in_p - size_in)))

    x_spec = pl.BlockSpec((tile, in_p), lambda i: (i, 0))
    o_spec = pl.BlockSpec((tile, out_p), lambda i: (i, 0))
    w0_spec = pl.BlockSpec((in_p, h_p), lambda i: (0, 0))
    b0_spec = pl.BlockSpec((1, h_p), lambda i: (0, 0))
    b1_spec = pl.BlockSpec((1, out_p), lambda i: (0, 0))

    if has_shortcut and fused:
        wcat_spec = pl.BlockSpec((h_p + in_p, out_p), lambda i: (0, 0))
        out_padded = pl.pallas_call(
            _resnet_block_kernel_shortcut_fused,
            out_shape=jax.ShapeDtypeStruct((n_p, out_p), out_dtype),
            grid=grid,
            in_specs=[x_spec, w0_spec, b0_spec, wcat_spec, b1_spec],
            out_specs=o_spec,
            compiler_params=compiler_params,
        )(xp, prep["w0"], prep["b0"], prep["wcat"], prep["b1"])
    elif has_shortcut:
        w1_spec = pl.BlockSpec((h_p, out_p), lambda i: (0, 0))
        ws_spec = pl.BlockSpec((in_p, out_p), lambda i: (0, 0))
        out_padded = pl.pallas_call(
            _resnet_block_kernel_shortcut,
            out_shape=jax.ShapeDtypeStruct((n_p, out_p), out_dtype),
            grid=grid,
            in_specs=[x_spec, w0_spec, b0_spec, w1_spec, b1_spec, ws_spec],
            out_specs=o_spec,
            compiler_params=compiler_params,
        )(xp, prep["w0"], prep["b0"], prep["w1"], prep["b1"], prep["ws"])
    else:
        w1_spec = pl.BlockSpec((h_p, out_p), lambda i: (0, 0))
        out_padded = pl.pallas_call(
            _resnet_block_kernel_identity,
            out_shape=jax.ShapeDtypeStruct((n_p, out_p), out_dtype),
            grid=grid,
            in_specs=[x_spec, w0_spec, b0_spec, w1_spec, b1_spec],
            out_specs=o_spec,
            compiler_params=compiler_params,
        )(xp, prep["w0"], prep["b0"], prep["w1"], prep["b1"])

    # ---- Slice only when padding was actually added.
    if n_p != n or out_p != size_out:
        out_padded = out_padded[:n, :size_out]
    return out_padded


# --------------------------- Reference & params -------------------------------

def resnet_block_fc_ref(x, params):
    """Pure-JAX (f32) reference mirroring the PyTorch forward."""
    net = jnp.maximum(x, 0.0) @ params["w0"] + params["b0"]
    dx = jnp.maximum(net, 0.0) @ params["w1"] + params["b1"]
    if params.get("ws", None) is not None:
        x_s = x @ params["ws"]
    else:
        x_s = x
    return x_s + dx


def init_params(key, size_in, size_out=None, size_h=None):
    """Deterministic init matching the PyTorch module's parameter shapes.

    Weights are stored as (in_features, out_features) = PyTorch weight.T.
    fc_1.weight is zero-initialized (nn.init.zeros_), fc_1.bias keeps default init.
    """
    if size_out is None:
        size_out = size_in
    if size_h is None:
        size_h = min(size_in, size_out)
    k0, kb0, kb1, ks = jax.random.split(key, 4)

    def uniform(k, shape, fan_in):
        bound = 1.0 / jnp.sqrt(fan_in)
        return jax.random.uniform(k, shape, jnp.float32, -bound, bound)

    params = {
        "w0": uniform(k0, (size_in, size_h), size_in),
        "b0": uniform(kb0, (size_h,), size_in),
        "w1": jnp.zeros((size_h, size_out), jnp.float32),  # nn.init.zeros_(fc_1.weight)
        "b1": uniform(kb1, (size_out,), size_h),
    }
    if size_in != size_out:
        params["ws"] = uniform(ks, (size_in, size_out), size_in)  # bias-free shortcut
    else:
        params["ws"] = None
    return params


# ----------------------------------- main --------------------------------------

if __name__ == "__main__":
    key = jax.random.PRNGKey(0)
    kx1, kp1, kx2, kp2, kw, kx4, kp4 = jax.random.split(key, 7)

    # Case 1: size_in != size_out -> fused shortcut kernel, bf16 weights,
    # prepared params reused across calls.
    n, size_in, size_h, size_out = 64, 32, 16, 48
    x1 = jax.random.normal(kx1, (n, size_in), jnp.float32)
    p1 = init_params(kp1, size_in, size_out, size_h)
    prep1 = prepare_params(p1)                       # one-time pad/cast
    out1 = jax.block_until_ready(resnet_block_fc(x1, prep1))
    ref1 = resnet_block_fc_ref(x1, p1)
    assert out1.shape == (n, size_out)
    assert jnp.allclose(out1, ref1, atol=2e-2, rtol=2e-2)

    # Case 2: identity shortcut; ragged batch exercises balanced row tiling.
    # (raw params path -> prepared on the fly)
    n2, size_in2 = 100, 32
    x2 = jax.random.normal(kx2, (n2, size_in2), jnp.float32)
    p2 = init_params(kp2, size_in2)
    out2 = jax.block_until_ready(resnet_block_fc(x2, p2))
    ref2 = resnet_block_fc_ref(x2, p2)
    assert out2.shape == (n2, size_in2)
    assert jnp.allclose(out2, ref2, atol=2e-2, rtol=2e-2)

    # Case 3: non-zero fc_1 weight, exact f32 path (no bf16 weights).
    p3 = dict(p1)
    p3["w1"] = 0.1 * jax.random.normal(kw, (size_h, size_out), jnp.float32)
    prep3 = prepare_params(p3, use_bf16=False)
    out3 = jax.block_until_ready(resnet_block_fc(x1, prep3))
    ref3 = resnet_block_fc_ref(x1, p3)
    assert jnp.allclose(out3, ref3, atol=1e-4, rtol=1e-4)

    # Case 4: larger ragged batch -> multi-step "parallel" grid (megacore path),
    # bf16 activation streaming enabled.
    n4, size_in4, size_out4 = 600, 64, 96
    x4 = jax.random.normal(kx4, (n4, size_in4), jnp.float32)
    p4 = init_params(kp4, size_in4, size_out4)
    prep4 = prepare_params(p4)
    out4 = jax.block_until_ready(resnet_block_fc(x4, prep4, bf16_activations=True))
    ref4 = resnet_block_fc_ref(x4, p4)
    assert out4.shape == (n4, size_out4)
    assert jnp.allclose(out4, ref4, atol=5e-2, rtol=5e-2)

    print("KERNEL_OK")
</pallas_src>

<mosaic_0001>
module attributes {stable_mosaic.version = 11 : i64} {
  func.func @_resnet_block_kernel_shortcut_fused(%arg0: i32, %arg1: memref<64x128xf32, #tpu.memory_space<vmem>>, %arg2: memref<128x128xbf16, #tpu.memory_space<vmem>>, %arg3: memref<1x128xf32, #tpu.memory_space<vmem>>, %arg4: memref<256x128xbf16, #tpu.memory_space<vmem>>, %arg5: memref<1x128xf32, #tpu.memory_space<vmem>>, %arg6: memref<64x128xf32, #tpu.memory_space<vmem>>) attributes {dimension_semantics = [#tpu.dimension_semantics<parallel>], iteration_bounds = array<i64: 1>, scalar_prefetch = 0 : i64, scratch_operands = 0 : i64, tpu.core_type = #tpu.core_type<tc>, window_params = [{transform_indices = @transform_0, window_bounds = array<i64: 64, 128>}, {pipeline_mode = #tpu.pipeline_mode<synchronous>, transform_indices = @transform_1, window_bounds = array<i64: 128, 128>}, {pipeline_mode = #tpu.pipeline_mode<synchronous>, transform_indices = @transform_2, window_bounds = array<i64: 1, 128>}, {pipeline_mode = #tpu.pipeline_mode<synchronous>, transform_indices = @transform_3, window_bounds = array<i64: 256, 128>}, {pipeline_mode = #tpu.pipeline_mode<synchronous>, transform_indices = @transform_4, window_bounds = array<i64: 1, 128>}, {transform_indices = @transform_5, window_bounds = array<i64: 64, 128>}]} {
    %c0 = arith.constant 0 : index
    %c0_0 = arith.constant 0 : index
    %0 = vector.load %arg1[%c0, %c0_0] : memref<64x128xf32, #tpu.memory_space<vmem>>, vector<64x128xf32>
    %cst = arith.constant 0.000000e+00 : f32
    %1 = vector.broadcast %cst : f32 to vector<64x128xf32>
    %2 = arith.maximumf %0, %1 : vector<64x128xf32>
    %3 = arith.truncf %2 : vector<64x128xf32> to vector<64x128xbf16>
    %c0_1 = arith.constant 0 : index
    %c0_2 = arith.constant 0 : index
    %4 = vector.load %arg2[%c0_1, %c0_2] : memref<128x128xbf16, #tpu.memory_space<vmem>>, vector<128x128xbf16>
    %cst_3 = arith.constant dense<0.000000e+00> : vector<64x128xf32>
    %5 = tpu.matmul %3, %4, %cst_3 {dimension_numbers = #tpu.dot_dimension_numbers<[1], [0], [0], [1], [0, 0, 1, 1], [], []>} : vector<64x128xbf16>, vector<128x128xbf16>, vector<64x128xf32> -> vector<64x128xf32>
    %c0_4 = arith.constant 0 : index
    %c0_5 = arith.constant 0 : index
    %6 = vector.load %arg3[%c0_4, %c0_5] : memref<1x128xf32, #tpu.memory_space<vmem>>, vector<1x128xf32>
    %7 = vector.broadcast %6 : vector<1x128xf32> to vector<64x128xf32>
    %8 = arith.addf %5, %7 : vector<64x128xf32>
    %cst_6 = arith.constant 0.000000e+00 : f32
    %9 = vector.broadcast %cst_6 : f32 to vector<64x128xf32>
    %10 = arith.maximumf %8, %9 : vector<64x128xf32>
    %11 = arith.truncf %10 : vector<64x128xf32> to vector<64x128xbf16>
    %12 = arith.truncf %0 : vector<64x128xf32> to vector<64x128xbf16>
    %13 = tpu.concatenate %11, %12 in 1 : vector<64x128xbf16>, vector<64x128xbf16> -> vector<64x256xbf16>
    %c0_7 = arith.constant 0 : index
    %c0_8 = arith.constant 0 : index
    %14 = vector.load %arg4[%c0_7, %c0_8] : memref<256x128xbf16, #tpu.memory_space<vmem>>, vector<256x128xbf16>
    %cst_9 = arith.constant dense<0.000000e+00> : vector<64x128xf32>
    %15 = tpu.matmul %13, %14, %cst_9 {dimension_numbers = #tpu.dot_dimension_numbers<[1], [0], [0], [1], [0, 0, 1, 1], [], []>} : vector<64x256xbf16>, vector<256x128xbf16>, vector<64x128xf32> -> vector<64x128xf32>
    %c0_10 = arith.constant 0 : index
    %c0_11 = arith.constant 0 : index
    %16 = vector.load %arg5[%c0_10, %c0_11] : memref<1x128xf32, #tpu.memory_space<vmem>>, vector<1x128xf32>
    %17 = vector.broadcast %16 : vector<1x128xf32> to vector<64x128xf32>
    %18 = arith.addf %15, %17 : vector<64x128xf32>
    %c0_12 = arith.constant 0 : index
    %c0_13 = arith.constant 0 : index
    %19 = vector.load %arg6[%c0_12, %c0_13] : memref<64x128xf32, #tpu.memory_space<vmem>>, vector<64x128xf32>
    tpu.vector_store %arg6[%c0_12, %c0_13], %18 {strides = array<i32>} : memref<64x128xf32, #tpu.memory_space<vmem>>, vector<64x128xf32>,
    return
  }
  func.func @transform_0(%arg0: i32) -> (i32, i32) {
    %c0_i32 = arith.constant 0 : i32
    %c0_i32_0 = arith.constant 0 : i32
    return %arg0, %c0_i32 : i32, i32
  }
  func.func @transform_1(%arg0: i32) -> (i32, i32) {
    %c0_i32 = arith.constant 0 : i32
    %c0_i32_0 = arith.constant 0 : i32
    %c0_i32_1 = arith.constant 0 : i32
    return %c0_i32, %c0_i32_0 : i32, i32
  }
  func.func @transform_2(%arg0: i32) -> (i32, i32) {
    %c0_i32 = arith.constant 0 : i32
    %c0_i32_0 = arith.constant 0 : i32
    %c0_i32_1 = arith.constant 0 : i32
    return %c0_i32, %c0_i32_0 : i32, i32
  }
  func.func @transform_3(%arg0: i32) -> (i32, i32) {
    %c0_i32 = arith.constant 0 : i32
    %c0_i32_0 = arith.constant 0 : i32
    %c0_i32_1 = arith.constant 0 : i32
    return %c0_i32, %c0_i32_0 : i32, i32
  }
  func.func @transform_4(%arg0: i32) -> (i32, i32) {
    %c0_i32 = arith.constant 0 : i32
    %c0_i32_0 = arith.constant 0 : i32
    %c0_i32_1 = arith.constant 0 : i32
    return %c0_i32, %c0_i32_0 : i32, i32
  }
  func.func @transform_5(%arg0: i32) -> (i32, i32) {
    %c0_i32 = arith.constant 0 : i32
    %c0_i32_0 = arith.constant 0 : i32
    return %arg0, %c0_i32 : i32, i32
  }
}

</mosaic_0001>

<bundles_post_ra>
// kernel: tpu_custom_call.1
= control target key start
LH: loop header
LB: loop body
LE: loop exit
PB: predicated region body
PF: predicated region fallthrough
CT: control target
= control target key end

     0   :  { %10 = vsyncpa [#allocation3], 0  ;;  %s787_s0 = inlined_call_operand.hbm [shape: f32[64,128], index: 0, kind: input, shape index: {}]   ;;  %s788_s1 = inlined_call_operand.hbm [shape: bf16[128,128], index: 1, kind: input, shape index: {}]   ;;  %s789_s2 = inlined_call_operand.vmem [shape: f32[1,128], index: 2, kind: input, shape index: {}]   ;;  %s790_s3 = inlined_call_operand.hbm [shape: bf16[256,128], index: 3, kind: input, shape index: {}]   ;;  %s791_s4 = inlined_call_operand.vmem [shape: f32[1,128], index: 4, kind: input, shape index: {}]   ;;  %s792_s5 = inlined_call_operand.hbm [shape: f32[64,128], index: 5, kind: output, shape index: {}]  }
   0x1   :  { %11 = vsyncpa [#allocation6], 0  ;;  %s30_s20 = sshll.u32 %s788_s1, 4  ;;  %s31_s20 = int_to_ptr.hbm [resolvable:$true] %s30_s20 }
   0x2   :  { %12 = vsyncpa [#allocation4], 0  ;;  %s715_s21 = smov [#allocation5]   ;;  %s17_s25 = sshll.u32 %s787_s0, 4  ;;  %s18_s25 = int_to_ptr.hbm [resolvable:$true] %s17_s25 }
   0x3   :  { %s32_s22 = sshll.u32 %s715_s21, 4  ;;  %s716_s26 = smov 64   ;;  %s33_s22 = int_to_ptr.vmem [resolvable:$true] %s32_s22 }
   0x4   :  { %s717_s27 = smov 4   ;;  %s718_s28 = smov [#allocation2]  }
   0x5   :  { %38 = dma.hbm_to_vmem [thread:$0]  %s31_s20, 1024, %s33_s22, [#allocation6], %s716_s26, %s716_s26, %s717_s27  }
   0x6   :  { %s19_s29 = sshll.u32 %s718_s28, 4  ;;  %s719_s30 = smov 128   ;;  %s20_s29 = int_to_ptr.vmem [resolvable:$true] %s19_s29 }
   0x7   :  { %s720_s6 = smov 8   ;;  %s45_s8 = sshll.u32 %s790_s3, 4  ;;  %s46_s8 = int_to_ptr.hbm [resolvable:$true] %s45_s8 }
   0x8   :  { %25 = dma.hbm_to_vmem [thread:$0]  %s18_s25, 1024, %s20_s29, [#allocation3], %s719_s30, %s719_s30, %s720_s6  }
   0x9   :  { %s721_s9 = smov [#allocation7]  }
   0xa   :  { %s47_s0 = sshll.u32 %s721_s9, 4  ;;  %s48_s0 = int_to_ptr.vmem [resolvable:$true] %s47_s0 }
   0xb   :  { %53 = dma.hbm_to_vmem [thread:$0]  %s46_s8, 2048, %s48_s0, [#allocation6], %s716_s26, %s716_s26, %s717_s27  }
   0xc   :  { %709 = dma.done.wait [#allocation3], 1024  }
   0xd   :  { %710 = vsyncadd [#allocation3], 4294966272 }
   0xe   :  { %711 = dma.done.wait [#allocation6], 3072  }
   0xf   :  { %712 = vsyncadd [#allocation6], 4294964224  ;;  %v578_v0 = vld [vmem:[#allocation5 + $0x38] sm:$0xff]  ;;  %v577_v1 = vld [vmem:[#allocation5 + $0x30] sm:$0xff]  ;;  %s461_s15 = sshll.u32 %s792_s5, 4  ;;  %s462_s15 = int_to_ptr.hbm [resolvable:$true] %s461_s15 }
  0x10   :  { %156 = vmatpush.bf16.msra.mxu0 %v578_v0  ;;  %595 = vmatpush.bf16.msra.mxu3 %v578_v0  ;;  %v576_v2 = vld [vmem:[#allocation5 + $0x28] sm:$0xff]  ;;  %v575_v3 = vld [vmem:[#allocation5 + $0x20] sm:$0xff]  ;;  %v574_v4 = vld [vmem:[#allocation5 + $0x18] sm:$0xff] }
  0x11   :  { %v573_v5 = vld [vmem:[#allocation5 + $0x10] sm:$0xff]  ;;  %v572_v6 = vld [vmem:[#allocation5 + $0x8] sm:$0xff]  ;;  %v68_v7 = vld [vmem:[#allocation2] sm:$0xff] }
  0x12   :  { %v69_v8 = vld [vmem:[#allocation2 + $0x8] sm:$0xff]  ;;  %v765_v9 = vld [vmem:[#allocation2 + $0x10] sm:$0xff]  ;;  %v767_v10 = vld [vmem:[#allocation2 + $0x18] sm:$0xff]  ;;  %v76_v11 = vmax.f32 %v68_v7, 0.0  ;;  %v201_v39 = vpack.c.bf16 %v68_v7, %v68_v7 }
  0x13   :  { %v77_v12 = vmax.f32 %v69_v8, 0.0  ;;  %v78_v13 = vmax.f32 %v765_v9, 0.0  ;;  %v79_v14 = vmax.f32 %v767_v10, 0.0  ;;  %v571_v15 = vld [vmem:[#allocation5] sm:$0xff]  ;;  %v594_v18 = vld [vmem:[#allocation7 + $0x78] sm:$0xff]  ;;  %v593_v20 = vld [vmem:[#allocation7 + $0x70] sm:$0xff]  ;;  %v202_v40 = vpack.c.bf16 %v69_v8, %v69_v8 }
  0x14   :  { %157 = vmatpush.bf16.msra.mxu0 %v577_v1  ;;  %596 = vmatpush.bf16.msra.mxu3 %v577_v1  ;;  %v586_v19 = vld [vmem:[#allocation7 + $0x38] sm:$0xff]  ;;  %v585_v21 = vld [vmem:[#allocation7 + $0x30] sm:$0xff]  ;;  %v72_v22 = vld [vmem:[#allocation2 + $0x20] sm:$0xff]  ;;  %v241_v43 = vunpack.c.l.b16 %v201_v39  ;;  %v203_v49 = vpack.c.bf16 %v765_v9, %v765_v9  ;;  %v204_v50 = vpack.c.bf16 %v767_v10, %v767_v10 }
  0x15   :  { %v84_v16 = vpack.c.bf16 %v77_v12, %v76_v11  ;;  %v85_v17 = vpack.c.bf16 %v79_v14, %v78_v13  ;;  %418 = vmatpush.bf16.msra.mxu2 %v594_v18  ;;  %389 = vmatpush.bf16.msra.mxu1 %v586_v19  ;;  %v73_v23 = vld [vmem:[#allocation2 + $0x28] sm:$0xff]  ;;  %v80_v26 = vmax.f32 %v72_v22, 0.0  ;;  %v591_v28 = vld [vmem:[#allocation7 + $0x60] sm:$0xff]  ;;  %v590_v30 = vld [vmem:[#allocation7 + $0x58] sm:$0xff]  ;;  %v242_v44 = vunpack.c.l.b16 %v202_v40 }
  0x16   :  { %v592_v24 = vld [vmem:[#allocation7 + $0x68] sm:$0xff]  ;;  %v81_v27 = vmax.f32 %v73_v23, 0.0  ;;  %v589_v31 = vld [vmem:[#allocation7 + $0x50] sm:$0xff]  ;;  %v75_v33 = vld [vmem:[#allocation2 + $0x38] sm:$0xff]  ;;  %v243_v51 = vunpack.c.l.b16 %v203_v49  ;;  %v244_v52 = vunpack.c.l.b16 %v204_v50  ;;  %v205_v56 = vpack.c.bf16 %v72_v22, %v72_v22 }
  0x17   :  { %v584_v25 = vld [vmem:[#allocation7 + $0x28] sm:$0xff]  ;;  %v74_v32 = vld [vmem:[#allocation2 + $0x30] sm:$0xff]  ;;  %v83_v35 = vmax.f32 %v75_v33, 0.0  ;;  %v583_v37 = vld [vmem:[#allocation7 + $0x20] sm:$0xff]  ;;  %v249_v45 = vpack.c.b16 %v242_v44, %v241_v43  ;;  %v206_v57 = vpack.c.bf16 %v73_v23, %v73_v23  ;;  %v208_v12 = vpack.c.bf16 %v75_v33, %v75_v33 }
  0x18   :  { %158 = vmatpush.bf16.msra.mxu0 %v576_v2  ;;  %597 = vmatpush.bf16.msra.mxu3 %v576_v2  ;;  %v86_v29 = vpack.c.bf16 %v81_v27, %v80_v26  ;;  %v82_v34 = vmax.f32 %v74_v32, 0.0  ;;  %v588_v38 = vld [vmem:[#allocation7 + $0x48] sm:$0xff]  ;;  %v582_v41 = vld [vmem:[#allocation7 + $0x18] sm:$0xff]  ;;  %v587_v42 = vld [vmem:[#allocation7 + $0x40] sm:$0xff]  ;;  %v250_v53 = vpack.c.b16 %v244_v52, %v243_v51  ;;  %v245_v59 = vunpack.c.l.b16 %v205_v56 }
  0x19   :  { %419 = vmatpush.bf16.msra.mxu2 %v593_v20  ;;  %390 = vmatpush.bf16.msra.mxu1 %v585_v21  ;;  %v581_v46 = vld [vmem:[#allocation7 + $0x10] sm:$0xff]  ;;  %v580_v47 = vld [vmem:[#allocation7 + $0x8] sm:$0xff]  ;;  %v579_v48 = vld [vmem:[#allocation7] sm:$0xff]  ;;  %v246_v60 = vunpack.c.l.b16 %v206_v57  ;;  %v207_v11 = vpack.c.bf16 %v74_v32, %v74_v32  ;;  %v248_v14 = vunpack.c.l.b16 %v208_v12 }
  0x1a   :  { %v87_v36 = vpack.c.bf16 %v83_v35, %v82_v34  ;;  %v611_v54 = vld [vmem:[%s789_s2] ss:$0 sm:$0xff] }
  0x1b   :  { %v251_v61 = vpack.c.b16 %v246_v60, %v245_v59  ;;  %v247_v13 = vunpack.c.l.b16 %v207_v11 }
  0x1c   :  { %159 = vmatpush.bf16.msra.mxu0 %v575_v3  ;;  %598 = vmatpush.bf16.msra.mxu3 %v575_v3 }
  0x1d   :  { %420 = vmatpush.bf16.msra.mxu2 %v592_v24  ;;  %391 = vmatpush.bf16.msra.mxu1 %v584_v25 }
  0x20   :  { %160 = vmatpush.bf16.msra.mxu0 %v574_v4  ;;  %599 = vmatpush.bf16.msra.mxu3 %v574_v4 }
  0x21   :  { %421 = vmatpush.bf16.msra.mxu2 %v591_v28  ;;  %392 = vmatpush.bf16.msra.mxu1 %v583_v37 }
  0x24   :  { %161 = vmatpush.bf16.msra.mxu0 %v573_v5  ;;  %600 = vmatpush.bf16.msra.mxu3 %v573_v5 }
  0x25   :  { %422 = vmatpush.bf16.msra.mxu2 %v590_v30  ;;  %393 = vmatpush.bf16.msra.mxu1 %v582_v41 }
  0x28   :  { %162 = vmatpush.bf16.msra.mxu0 %v572_v6  ;;  %601 = vmatpush.bf16.msra.mxu3 %v572_v6 }
  0x29   :  { %423 = vmatpush.bf16.msra.mxu2 %v589_v31  ;;  %394 = vmatpush.bf16.msra.mxu1 %v581_v46  ;;  %v612_v46 = vld [vmem:[%s791_s4] ss:$0 sm:$0xff]  ;;  %s722_s4 = smov [#allocation8]  }
  0x2a   :  { %s459_s12 = sshll.u32 %s722_s4, 4  ;;  %s460_s12 = int_to_ptr.vmem [resolvable:$true] %s459_s12 }
  0x2c   :  { %163 = vmatpush.bf16.msra.mxu0 %v571_v15  ;;  %602 = vmatpush.bf16.msra.mxu3 %v571_v15 }
  0x2d   :  { %424 = vmatpush.bf16.msra.mxu2 %v588_v38  ;;  %395 = vmatpush.bf16.msra.mxu1 %v580_v47 }
  0x2f   :  { %164 = vmatmul.bf16.vlgmr.msra.gmra.mxu0 %v84_v16  ;;  %169 = vmatmul.bf16.vlgmr.msra.gmra.mxu3 %v85_v17  ;;  %v252_v17 = vpack.c.b16 %v248_v14, %v247_v13 }
  0x31   :  { %425 = vmatpush.bf16.msra.mxu2 %v587_v42  ;;  %396 = vmatpush.bf16.msra.mxu1 %v579_v48 }
  0x34   :  { %426 = vmatmul.bf16.vlgmr.msra.gmra.mxu2 %v249_v45 }
  0x3f   :  { %174 = vmatmul.bf16.gmra.mxu3 %v86_v29 }
  0x44   :  { %431 = vmatmul.bf16.gmra.mxu2 %v250_v53 }
  0x4f   :  { %179 = vmatmul.bf16.gmra.mxu3 %v87_v36 }
  0x54   :  { %436 = vmatmul.bf16.gmra.mxu2 %v251_v61 }
  0x64   :  { %441 = vmatmul.bf16.gmra.mxu2 %v252_v17 }
  0xac   :  { %v165_v55 = vpop.f32.mrf.mxu0 }
  0xad   :  { %v166_v58 = vadd.f32 %v611_v54, %v165_v55 }
  0xaf   :  { %v185_v63 = vmax.f32 %v166_v58, 0.0 }
  0xb1   :  { %v193_v2 = vpack.c.bf16 %v185_v63, %v185_v63 }
  0xb2   :  { %v170_v62 = vpop.f32.mrf.mxu3 }
  0xb3   :  { %v217_v6 = vunpack.c.l.b16 %v193_v2  ;;  %v171_v8 = vadd.f32 %v611_v54, %v170_v62 }
  0xb4   :  { %v167_v0 = vpop.f32.mrf.mxu0 }
  0xb5   :  { %v168_v1 = vadd.f32 %v611_v54, %v167_v0  ;;  %v187_v15 = vmax.f32 %v171_v8, 0.0 }
  0xb7   :  { %v186_v3 = vmax.f32 %v168_v1, 0.0  ;;  %v195_v19 = vpack.c.bf16 %v187_v15, %v187_v15  ;;  %v427_v45 = vpop.f32.mrf.mxu2 }
  0xb9   :  { %v194_v4 = vpack.c.bf16 %v186_v3, %v186_v3  ;;  %v219_v21 = vunpack.c.l.b16 %v195_v19 }
  0xba   :  { %v172_v5 = vpop.f32.mrf.mxu3 }
  0xbb   :  { %v218_v7 = vunpack.c.l.b16 %v194_v4  ;;  %v173_v9 = vadd.f32 %v611_v54, %v172_v5 }
  0xbd   :  { %v225_v10 = vpack.c.b16 %v218_v7, %v217_v6  ;;  %v188_v16 = vmax.f32 %v173_v9, 0.0 }
  0xbf   :  { %397 = vmatmul.bf16.vlgmr.msra.gmra.mxu1 %v225_v10  ;;  %v196_v20 = vpack.c.bf16 %v188_v16, %v188_v16  ;;  %v429_v47 = vpop.f32.mrf.mxu2 }
  0xc1   :  { %v220_v22 = vunpack.c.l.b16 %v196_v20 }
  0xc2   :  { %v175_v18 = vpop.f32.mrf.mxu3 }
  0xc3   :  { %v176_v24 = vadd.f32 %v611_v54, %v175_v18  ;;  %v226_v26 = vpack.c.b16 %v220_v22, %v219_v21 }
  0xc5   :  { %v189_v27 = vmax.f32 %v176_v24, 0.0 }
  0xc7   :  { %v197_v30 = vpack.c.bf16 %v189_v27, %v189_v27  ;;  %v432_v52 = vpop.f32.mrf.mxu2 }
  0xc9   :  { %v221_v32 = vunpack.c.l.b16 %v197_v30 }
  0xca   :  { %v177_v23 = vpop.f32.mrf.mxu3 }
  0xcb   :  { %v178_v25 = vadd.f32 %v611_v54, %v177_v23 }
  0xcd   :  { %v190_v28 = vmax.f32 %v178_v25, 0.0 }
  0xcf   :  { %402 = vmatmul.bf16.gmra.mxu1 %v226_v26  ;;  %v198_v31 = vpack.c.bf16 %v190_v28, %v190_v28  ;;  %v434_v57 = vpop.f32.mrf.mxu2 }
  0xd1   :  { %v222_v33 = vunpack.c.l.b16 %v198_v31 }
  0xd2   :  { %v180_v29 = vpop.f32.mrf.mxu3 }
  0xd3   :  { %v181_v35 = vadd.f32 %v611_v54, %v180_v29  ;;  %v227_v37 = vpack.c.b16 %v222_v33, %v221_v32 }
  0xd5   :  { %v191_v38 = vmax.f32 %v181_v35, 0.0 }
  0xd7   :  { %v199_v40 = vpack.c.bf16 %v191_v38, %v191_v38  ;;  %v437_v62 = vpop.f32.mrf.mxu2 }
  0xd9   :  { %v223_v42 = vunpack.c.l.b16 %v199_v40 }
  0xda   :  { %v182_v34 = vpop.f32.mrf.mxu3 }
  0xdb   :  { %v183_v36 = vadd.f32 %v611_v54, %v182_v34 }
  0xdd   :  { %v192_v39 = vmax.f32 %v183_v36, 0.0 }
  0xdf   :  { %407 = vmatmul.bf16.gmra.mxu1 %v227_v37  ;;  %v200_v41 = vpack.c.bf16 %v192_v39, %v192_v39  ;;  %v439_v2 = vpop.f32.mrf.mxu2 }
  0xe1   :  { %v224_v43 = vunpack.c.l.b16 %v200_v41 }
  0xe3   :  { %v228_v44 = vpack.c.b16 %v224_v43, %v223_v42 }
  0xe7   :  { %v442_v6 = vpop.f32.mrf.mxu2 }
  0xef   :  { %412 = vmatmul.bf16.gmra.mxu1 %v228_v44  ;;  %v444_v12 = vpop.f32.mrf.mxu2 }
 0x13c   :  { %v398_v48 = vpop.f32.mrf.mxu1 }
 0x13d   :  { %v399_v49 = vadd.f32 %v612_v46, %v398_v48 }
 0x13f   :  { %v428_v50 = vadd.f32 %v427_v45, %v399_v49 }
 0x141   :  { %447 = vst [vmem:[#allocation8] sm:$0xff] %v428_v50 }
 0x144   :  { %v400_v51 = vpop.f32.mrf.mxu1 }
 0x145   :  { %v401_v53 = vadd.f32 %v612_v46, %v400_v51 }
 0x147   :  { %v430_v54 = vadd.f32 %v429_v47, %v401_v53 }
 0x149   :  { %448 = vst [vmem:[#allocation8 + $0x8] sm:$0xff] %v430_v54 }
 0x14c   :  { %v403_v55 = vpop.f32.mrf.mxu1 }
 0x14d   :  { %v404_v56 = vadd.f32 %v612_v46, %v403_v55 }
 0x14f   :  { %v433_v58 = vadd.f32 %v432_v52, %v404_v56 }
 0x151   :  { %449 = vst [vmem:[#allocation8 + $0x10] sm:$0xff] %v433_v58 }
 0x154   :  { %v405_v59 = vpop.f32.mrf.mxu1 }
 0x155   :  { %v406_v60 = vadd.f32 %v612_v46, %v405_v59 }
 0x157   :  { %v435_v61 = vadd.f32 %v434_v57, %v406_v60 }
 0x159   :  { %450 = vst [vmem:[#allocation8 + $0x18] sm:$0xff] %v435_v61 }
 0x15c   :  { %v408_v63 = vpop.f32.mrf.mxu1 }
 0x15d   :  { %v409_v0 = vadd.f32 %v612_v46, %v408_v63 }
 0x15f   :  { %v438_v1 = vadd.f32 %v437_v62, %v409_v0 }
 0x161   :  { %451 = vst [vmem:[#allocation8 + $0x20] sm:$0xff] %v438_v1 }
 0x164   :  { %v410_v3 = vpop.f32.mrf.mxu1 }
 0x165   :  { %v411_v4 = vadd.f32 %v612_v46, %v410_v3 }
 0x167   :  { %v440_v5 = vadd.f32 %v439_v2, %v411_v4 }
 0x169   :  { %452 = vst [vmem:[#allocation8 + $0x28] sm:$0xff] %v440_v5 }
 0x16c   :  { %v413_v7 = vpop.f32.mrf.mxu1 }
 0x16d   :  { %v414_v8 = vadd.f32 %v612_v46, %v413_v7 }
 0x16f   :  { %v443_v9 = vadd.f32 %v442_v6, %v414_v8 }
 0x171   :  { %453 = vst [vmem:[#allocation8 + $0x30] sm:$0xff] %v443_v9 }
 0x174   :  { %v415_v10 = vpop.f32.mrf.mxu1 }
 0x175   :  { %v416_v11 = vadd.f32 %v612_v46, %v415_v10 }
 0x177   :  { %v445_v13 = vadd.f32 %v444_v12, %v416_v11 }
 0x179   :  { %454 = vst [vmem:[#allocation8 + $0x38] sm:$0xff] %v445_v13 }
 0x17a   :  { %467 = dma.vmem_to_hbm [thread:$0]  %s460_s12, 1024, %s462_s15, [#allocation4], %s719_s30, %s719_s30, %s720_s6  }
 0x17b   :  { %713 = dma.done.wait [#allocation4], 1024  }
 0x17c   :  { %714 = vsyncadd [#allocation4], 4294966272 }
 0x17d   :  { %472 = vsyncpa [#allocation3], 1 }
 0x17e   :  { %473 = vsyncpa [#allocation6], 1 }
 0x17f   :  { %474 = vsyncpa [#allocation4], 1 }

</bundles_post_ra>
